<compile_context>
chip_gen: v6e
topology: v6e:2x2x1
jax: 0.10.0
libtpu: 0.0.40
codegen_flags: <defaults>
</compile_context>

<pallas_src>
import jax
import jax.numpy as jnp
from jax.experimental import pallas as pl
from jax.experimental.pallas import tpu as pltpu

NEG_SLOPE = 0.01      # nn.LeakyReLU default negative_slope
H1, H2 = 300, 100     # module hidden sizes
LANE = 128
H1P = 384             # 300 padded to 3*128
H2P = 128             # 100 padded to 128
TILE_B = 512          # default batch tile (rows); bounded by VMEM, not vregs
VMEM_BUDGET = 40 * 1024 * 1024   # tile-fitting budget (< v7x 64 MiB/TC)


def _round_up(n, m):
    return ((n + m - 1) // m) * m


def _leaky_relu(x):
    return jnp.where(x > 0, x, NEG_SLOPE * x)


def mlp_kernel(x_ref, w1_ref, b1_ref, w2_ref, b2_ref, w3_ref, b3_ref, o_ref):
    # layer 1: Linear(input_dim, 384pad) + LeakyReLU.  Cast LHS to the weight
    # dtype so the bf16 path runs the MXU at bf16 rate (f32 accumulation).
    x = x_ref[...].astype(w1_ref.dtype)
    h1 = jnp.dot(x, w1_ref[...], preferred_element_type=jnp.float32) + b1_ref[...]
    h1 = _leaky_relu(h1)
    # layer 2: Linear(384pad, 128pad) + LeakyReLU
    h2 = jnp.dot(h1.astype(w2_ref.dtype), w2_ref[...],
                 preferred_element_type=jnp.float32) + b2_ref[...]
    h2 = _leaky_relu(h2)
    # layer 3: Linear(128pad, out_pad)
    out = jnp.dot(h2.astype(w3_ref.dtype), w3_ref[...],
                  preferred_element_type=jnp.float32) + b3_ref[...]
    o_ref[...] = out.astype(o_ref.dtype)


def _pad_axis(a, target, axis):
    pad = target - a.shape[axis]
    if pad <= 0:
        return a
    widths = [(0, 0)] * a.ndim
    widths[axis] = (0, pad)
    return jnp.pad(a, widths)


def prepare_params(params, weight_dtype=jnp.float32):
    """Zero-pad feature dims to lane (128) multiples.  Call ONCE and reuse.

    LeakyReLU(0) == 0, so zero padding propagates as exact zeros through the
    hidden layers; padded output columns are sliced off by the wrapper (or
    left in place with slice_output=False).  weight_dtype=jnp.bfloat16 enables
    the bf16 MXU rate (3-4x on v6e/v7x, the only native rate on v5e) while
    keeping f32 accumulation; biases stay f32.
    """
    out_dim = params["w3"].shape[1]
    out_pad = _round_up(out_dim, LANE)
    w1 = _pad_axis(params["w1"], H1P, 1).astype(weight_dtype)
    b1 = _pad_axis(params["b1"], H1P, 1).astype(jnp.float32)
    w2 = _pad_axis(_pad_axis(params["w2"], H1P, 0), H2P, 1).astype(weight_dtype)
    b2 = _pad_axis(params["b2"], H2P, 1).astype(jnp.float32)
    w3 = _pad_axis(_pad_axis(params["w3"], H2P, 0), out_pad, 1).astype(weight_dtype)
    b3 = _pad_axis(params["b3"], out_pad, 1).astype(jnp.float32)
    return (w1, b1, w2, b2, w3, b3), out_dim


def _fit_tile_to_vmem(block_b, in_dim, out_pad, weight_bytes, budget=VMEM_BUDGET):
    """Shrink the batch tile until the pipeline footprint fits the budget.

    Footprint = double-buffered x + out tiles, f32 h1/h2 activation scratch
    (compiler-materialized in VMEM), and the resident weights.  The 40 MiB
    budget leaves headroom under v7x's 64 MiB/TC; v5e/v6e (128 MiB) always fit.
    """
    def need(b):
        return (2 * b * in_dim * 4 + 2 * b * out_pad * 4
                + b * (H1P + H2P) * 4 + weight_bytes)
    while block_b > 128 and need(block_b) > budget:
        block_b = max(128, (block_b // 2) // 128 * 128)
    return block_b


def bottom_model_grads_forward(x, prepared, *, tile_b=TILE_B, slice_output=True):
    """Fused 3-layer MLP forward.

    x: (batch, input_dim) float32.  `prepared` = prepare_params(params, ...)
    (hoisted out of the hot path).  slice_output=False returns the
    (padded_batch, out_pad) slab and skips an extra HBM copy.
    """
    (w1, b1, w2, b2, w3, b3), out_dim = prepared
    batch, in_dim = x.shape
    out_pad = w3.shape[1]
    weight_bytes = (
        (w1.size + w2.size + w3.size) * w1.dtype.itemsize
        + (b1.size + b2.size + b3.size) * 4)

    if batch >= 256:
        # Tiled path: cap the tile at half the (128-rounded) batch so the grid
        # always has >= 2 steps -> the "parallel" axis shards over both v7x TCs.
        half = _round_up(pl.cdiv(batch, 2), 128)
        block_b = min(_round_up(tile_b, 128), half)
        block_b = _fit_tile_to_vmem(block_b, in_dim, out_pad, weight_bytes)
        padded_batch = _round_up(batch, block_b)
        if padded_batch != batch:
            x = jnp.pad(x, ((0, padded_batch - batch), (0, 0)))
        grid = (padded_batch // block_b,)
    else:
        # Small / latency-bound batch: single grid step, whole-array blocks.
        padded_batch = batch
        grid = (1,)
        block_b = batch

    vmem = pltpu.MemorySpace.VMEM
    # Single-buffer the never-re-fetched weights only when they are big enough
    # to pressure VMEM (large in_dim on v7x); otherwise keep the default.
    single_buffer_weights = weight_bytes > (1 << 20)

    def resident(shape):
        # Constant index_map -> same block every grid step: weights/biases stay
        # VMEM-resident and are not re-DMA'd per batch tile.
        idx = lambda i: (0,) * len(shape)
        if single_buffer_weights:
            try:
                return pl.BlockSpec(shape, idx, memory_space=vmem,
                                    pipeline_mode=pl.Buffered(1))
            except TypeError:   # older jax without pipeline_mode
                pass
        return pl.BlockSpec(shape, idx, memory_space=vmem)

    x_spec = pl.BlockSpec((block_b, in_dim), lambda i: (i, 0), memory_space=vmem)
    o_spec = pl.BlockSpec((block_b, out_pad), lambda i: (i, 0), memory_space=vmem)

    flops = 2 * padded_batch * (in_dim * H1P + H1P * H2P + H2P * out_pad)
    bytes_accessed = (
        4 * padded_batch * (in_dim + out_pad)
        + weight_bytes)

    out = pl.pallas_call(
        mlp_kernel,
        out_shape=jax.ShapeDtypeStruct((padded_batch, out_pad), jnp.float32),
        grid=grid,
        in_specs=[
            x_spec,
            resident(w1.shape), resident(b1.shape),
            resident(w2.shape), resident(b2.shape),
            resident(w3.shape), resident(b3.shape),
        ],
        out_specs=o_spec,
        compiler_params=pltpu.CompilerParams(
            dimension_semantics=("parallel",),      # megacore-shard batch on v7x
            vmem_limit_bytes=48 * 1024 * 1024,      # headroom under v7x 64 MiB/TC
        ),
        cost_estimate=pl.CostEstimate(
            flops=flops, transcendentals=0, bytes_accessed=bytes_accessed),
    )(x, w1, b1, w2, b2, w3, b3)

    if slice_output:
        # One extra XLA copy; skip it when the consumer tolerates padding.
        return out[:batch, :out_dim]
    return out


def init_params(key, input_dim, output_dim=100):
    """Deterministic init matching the PyTorch module's shapes.

    weights_init applies kaiming_normal_ (fan_in mode, gain=sqrt(2)) to Linear
    weights; biases keep PyTorch's default U(-1/sqrt(fan_in), 1/sqrt(fan_in)).
    Weights are stored transposed: (in_features, out_features).
    """
    dims = [(input_dim, H1), (H1, H2), (H2, output_dim)]
    params = {}
    for i, (fan_in, fan_out) in enumerate(dims, start=1):
        key, kw, kb = jax.random.split(key, 3)
        std = (2.0 / fan_in) ** 0.5
        params[f"w{i}"] = std * jax.random.normal(kw, (fan_in, fan_out), jnp.float32)
        bound = 1.0 / (fan_in ** 0.5)
        params[f"b{i}"] = jax.random.uniform(
            kb, (1, fan_out), jnp.float32, minval=-bound, maxval=bound
        )
    return params


def reference_forward(x, params):
    h1 = _leaky_relu(x @ params["w1"] + params["b1"])
    h2 = _leaky_relu(h1 @ params["w2"] + params["b2"])
    return h2 @ params["w3"] + params["b3"]


if __name__ == "__main__":
    key = jax.random.PRNGKey(0)
    batch, input_dim, output_dim = 8, 32, 100

    key, kx = jax.random.split(key)
    x = jax.random.normal(kx, (batch, input_dim), jnp.float32)
    params = init_params(key, input_dim, output_dim)

    # Weights are padded/cast ONCE and reused across calls.
    prepared_f32 = prepare_params(params)                 # exact f32 path
    prepared_bf16 = prepare_params(params, jnp.bfloat16)  # bf16-MXU path

    # Tiny-batch path: single grid step, f32.
    out = jax.block_until_ready(bottom_model_grads_forward(x, prepared_f32))
    ref = reference_forward(x, params)
    assert out.shape == (batch, output_dim), out.shape
    assert jnp.allclose(out, ref, atol=1e-4, rtol=1e-4), \
        float(jnp.max(jnp.abs(out - ref)))

    # Batch-tiled path (>=2 grid steps), f32, weights VMEM-resident.
    key, kxb = jax.random.split(key)
    xb = jax.random.normal(kxb, (384, input_dim), jnp.float32)
    outb = jax.block_until_ready(bottom_model_grads_forward(xb, prepared_f32))
    refb = reference_forward(xb, params)
    assert outb.shape == (384, output_dim), outb.shape
    assert jnp.allclose(outb, refb, atol=1e-4, rtol=1e-4), \
        float(jnp.max(jnp.abs(outb - refb)))

    # bf16-operand MXU path (f32 accumulation), loose tolerance.
    outbf = jax.block_until_ready(bottom_model_grads_forward(xb, prepared_bf16))
    assert outbf.shape == (384, output_dim), outbf.shape
    assert jnp.allclose(outbf, refb, atol=0.3, rtol=0.05), \
        float(jnp.max(jnp.abs(outbf - refb)))

    print("KERNEL_OK")
</pallas_src>

<mosaic_0001>
module attributes {stable_mosaic.version = 11 : i64} {
  func.func @mlp_kernel(%arg0: i32, %arg1: memref<8x32xf32, #tpu.memory_space<vmem>>, %arg2: memref<32x384xf32, #tpu.memory_space<vmem>>, %arg3: memref<1x384xf32, #tpu.memory_space<vmem>>, %arg4: memref<384x128xf32, #tpu.memory_space<vmem>>, %arg5: memref<1x128xf32, #tpu.memory_space<vmem>>, %arg6: memref<128x128xf32, #tpu.memory_space<vmem>>, %arg7: memref<1x128xf32, #tpu.memory_space<vmem>>, %arg8: memref<8x128xf32, #tpu.memory_space<vmem>>) attributes {dimension_semantics = [#tpu.dimension_semantics<parallel>], iteration_bounds = array<i64: 1>, scalar_prefetch = 0 : i64, scratch_operands = 0 : i64, tpu.core_type = #tpu.core_type<tc>, window_params = [{transform_indices = @transform_0, window_bounds = array<i64: 8, 32>}, {pipeline_mode = #tpu.pipeline_mode<synchronous>, transform_indices = @transform_1, window_bounds = array<i64: 32, 384>}, {pipeline_mode = #tpu.pipeline_mode<synchronous>, transform_indices = @transform_2, window_bounds = array<i64: 1, 384>}, {pipeline_mode = #tpu.pipeline_mode<synchronous>, transform_indices = @transform_3, window_bounds = array<i64: 384, 128>}, {pipeline_mode = #tpu.pipeline_mode<synchronous>, transform_indices = @transform_4, window_bounds = array<i64: 1, 128>}, {pipeline_mode = #tpu.pipeline_mode<synchronous>, transform_indices = @transform_5, window_bounds = array<i64: 128, 128>}, {pipeline_mode = #tpu.pipeline_mode<synchronous>, transform_indices = @transform_6, window_bounds = array<i64: 1, 128>}, {transform_indices = @transform_7, window_bounds = array<i64: 8, 128>}]} {
    %c0 = arith.constant 0 : index
    %c0_0 = arith.constant 0 : index
    %0 = vector.load %arg1[%c0, %c0_0] : memref<8x32xf32, #tpu.memory_space<vmem>>, vector<8x32xf32>
    %c0_1 = arith.constant 0 : index
    %c0_2 = arith.constant 0 : index
    %1 = vector.load %arg2[%c0_1, %c0_2] : memref<32x384xf32, #tpu.memory_space<vmem>>, vector<32x384xf32>
    %cst = arith.constant dense<0.000000e+00> : vector<8x384xf32>
    %2 = tpu.matmul %0, %1, %cst {dimension_numbers = #tpu.dot_dimension_numbers<[1], [0], [0], [1], [0, 0, 1, 1], [], []>} : vector<8x32xf32>, vector<32x384xf32>, vector<8x384xf32> -> vector<8x384xf32>
    %c0_3 = arith.constant 0 : index
    %c0_4 = arith.constant 0 : index
    %3 = vector.load %arg3[%c0_3, %c0_4] : memref<1x384xf32, #tpu.memory_space<vmem>>, vector<1x384xf32>
    %4 = vector.broadcast %3 : vector<1x384xf32> to vector<8x384xf32>
    %5 = arith.addf %2, %4 : vector<8x384xf32>
    %cst_5 = arith.constant 0.000000e+00 : f32
    %6 = vector.broadcast %cst_5 : f32 to vector<8x384xf32>
    %7 = arith.cmpf ogt, %5, %6 : vector<8x384xf32>
    %cst_6 = arith.constant 0.00999999977 : f32
    %8 = vector.broadcast %cst_6 : f32 to vector<8x384xf32>
    %9 = arith.mulf %8, %5 : vector<8x384xf32>
    %10 = arith.select %7, %5, %9 : vector<8x384xi1>, vector<8x384xf32>
    %c0_7 = arith.constant 0 : index
    %c0_8 = arith.constant 0 : index
    %11 = vector.load %arg4[%c0_7, %c0_8] : memref<384x128xf32, #tpu.memory_space<vmem>>, vector<384x128xf32>
    %cst_9 = arith.constant dense<0.000000e+00> : vector<8x128xf32>
    %12 = tpu.matmul %10, %11, %cst_9 {dimension_numbers = #tpu.dot_dimension_numbers<[1], [0], [0], [1], [0, 0, 1, 1], [], []>} : vector<8x384xf32>, vector<384x128xf32>, vector<8x128xf32> -> vector<8x128xf32>
    %c0_10 = arith.constant 0 : index
    %c0_11 = arith.constant 0 : index
    %13 = vector.load %arg5[%c0_10, %c0_11] : memref<1x128xf32, #tpu.memory_space<vmem>>, vector<1x128xf32>
    %14 = vector.broadcast %13 : vector<1x128xf32> to vector<8x128xf32>
    %15 = arith.addf %12, %14 : vector<8x128xf32>
    %cst_12 = arith.constant 0.000000e+00 : f32
    %16 = vector.broadcast %cst_12 : f32 to vector<8x128xf32>
    %17 = arith.cmpf ogt, %15, %16 : vector<8x128xf32>
    %cst_13 = arith.constant 0.00999999977 : f32
    %18 = vector.broadcast %cst_13 : f32 to vector<8x128xf32>
    %19 = arith.mulf %18, %15 : vector<8x128xf32>
    %20 = arith.select %17, %15, %19 : vector<8x128xi1>, vector<8x128xf32>
    %c0_14 = arith.constant 0 : index
    %c0_15 = arith.constant 0 : index
    %21 = vector.load %arg6[%c0_14, %c0_15] : memref<128x128xf32, #tpu.memory_space<vmem>>, vector<128x128xf32>
    %cst_16 = arith.constant dense<0.000000e+00> : vector<8x128xf32>
    %22 = tpu.matmul %20, %21, %cst_16 {dimension_numbers = #tpu.dot_dimension_numbers<[1], [0], [0], [1], [0, 0, 1, 1], [], []>} : vector<8x128xf32>, vector<128x128xf32>, vector<8x128xf32> -> vector<8x128xf32>
    %c0_17 = arith.constant 0 : index
    %c0_18 = arith.constant 0 : index
    %23 = vector.load %arg7[%c0_17, %c0_18] : memref<1x128xf32, #tpu.memory_space<vmem>>, vector<1x128xf32>
    %24 = vector.broadcast %23 : vector<1x128xf32> to vector<8x128xf32>
    %25 = arith.addf %22, %24 : vector<8x128xf32>
    %c0_19 = arith.constant 0 : index
    %c0_20 = arith.constant 0 : index
    %26 = vector.load %arg8[%c0_19, %c0_20] : memref<8x128xf32, #tpu.memory_space<vmem>>, vector<8x128xf32>
    tpu.vector_store %arg8[%c0_19, %c0_20], %25 {strides = array<i32>} : memref<8x128xf32, #tpu.memory_space<vmem>>, vector<8x128xf32>,
    return
  }
  func.func @transform_0(%arg0: i32) -> (i32, i32) {
    %c0_i32 = arith.constant 0 : i32
    %c0_i32_0 = arith.constant 0 : i32
    return %arg0, %c0_i32 : i32, i32
  }
  func.func @transform_1(%arg0: i32) -> (i32, i32) {
    %c0_i32 = arith.constant 0 : i32
    %c0_i32_0 = arith.constant 0 : i32
    %c0_i32_1 = arith.constant 0 : i32
    return %c0_i32, %c0_i32_0 : i32, i32
  }
  func.func @transform_2(%arg0: i32) -> (i32, i32) {
    %c0_i32 = arith.constant 0 : i32
    %c0_i32_0 = arith.constant 0 : i32
    %c0_i32_1 = arith.constant 0 : i32
    return %c0_i32, %c0_i32_0 : i32, i32
  }
  func.func @transform_3(%arg0: i32) -> (i32, i32) {
    %c0_i32 = arith.constant 0 : i32
    %c0_i32_0 = arith.constant 0 : i32
    %c0_i32_1 = arith.constant 0 : i32
    return %c0_i32, %c0_i32_0 : i32, i32
  }
  func.func @transform_4(%arg0: i32) -> (i32, i32) {
    %c0_i32 = arith.constant 0 : i32
    %c0_i32_0 = arith.constant 0 : i32
    %c0_i32_1 = arith.constant 0 : i32
    return %c0_i32, %c0_i32_0 : i32, i32
  }
  func.func @transform_5(%arg0: i32) -> (i32, i32) {
    %c0_i32 = arith.constant 0 : i32
    %c0_i32_0 = arith.constant 0 : i32
    %c0_i32_1 = arith.constant 0 : i32
    return %c0_i32, %c0_i32_0 : i32, i32
  }
  func.func @transform_6(%arg0: i32) -> (i32, i32) {
    %c0_i32 = arith.constant 0 : i32
    %c0_i32_0 = arith.constant 0 : i32
    %c0_i32_1 = arith.constant 0 : i32
    return %c0_i32, %c0_i32_0 : i32, i32
  }
  func.func @transform_7(%arg0: i32) -> (i32, i32) {
    %c0_i32 = arith.constant 0 : i32
    %c0_i32_0 = arith.constant 0 : i32
    return %arg0, %c0_i32 : i32, i32
  }
}

</mosaic_0001>

<bundles_post_ra>
// kernel: tpu_custom_call.1
= control target key start
LH: loop header
LB: loop body
LE: loop exit
PB: predicated region body
PF: predicated region fallthrough
CT: control target
= control target key end

     0   :  { %12 = vsyncpa [#allocation3], 0  ;;  %s971_s0 = inlined_call_operand.hbm [shape: f32[8,32], index: 0, kind: input, shape index: {}]   ;;  %s972_s1 = inlined_call_operand.hbm [shape: f32[32,384], index: 1, kind: input, shape index: {}]   ;;  %s973_s2 = inlined_call_operand.vmem [shape: f32[1,384], index: 2, kind: input, shape index: {}]   ;;  %s974_s3 = inlined_call_operand.hbm [shape: f32[384,128], index: 3, kind: input, shape index: {}]   ;;  %s975_s4 = inlined_call_operand.vmem [shape: f32[1,128], index: 4, kind: input, shape index: {}]   ;;  %s976_s5 = inlined_call_operand.hbm [shape: f32[128,128], index: 5, kind: input, shape index: {}]   ;;  %s977_s6 = inlined_call_operand.vmem [shape: f32[1,128], index: 6, kind: input, shape index: {}]   ;;  %s978_s7 = inlined_call_operand.hbm [shape: f32[8,128], index: 7, kind: output, shape index: {}]  }
   0x1   :  { %13 = vsyncpa [#allocation6], 0 }
   0x2   :  { %14 = vsyncpa [#allocation9], 0 }
   0x3   :  { %15 = vsyncpa [#allocation4], 0  ;;  %s851_s24 = smov [#allocation5]  }
   0x4   :  { %s31_s25 = sshll.u32 %s851_s24, 4  ;;  %s32_s25 = int_to_ptr.vmem [resolvable:$true] %s31_s25 }
   0x5   :  { %s751_s26 = scalar_lea.vmem %s32_s25, 1536  ;;  %p756_p1 = scmp.lt.s32.totalorder %s32_s25, %s32_s25 }
   0x6   :  { %p752_p0 = scmp.ne.s32.totalorder %s32_s25, %s751_s26  ;;  %p757_p2 = scmp.lt.s32.totalorder %s751_s26, %s751_s26 }
   0x8   :  { %p758_p3 = por %p757_p2, %p756_p1 }
   0xa   :  { %p759_p4 = pnand %p758_p3, %p752_p0 }
   0xc   :  { %762 = shalt.err (!%p759_p4)
}
   0xd   :  { %s852_s27 = smov 384   ;;  %s853_s28 = smov 24  }
   0xe   :  { %37 = dma.hbm_to_vmem [thread:$0]  %s972_s1, 1536, %s32_s25, [#allocation6], %s852_s27, %s852_s27, %s853_s28  }
   0xf   :  { %s854_s8 = smov [#allocation2]   ;;  %s855_s10 = smov [#allocation7]  }
  0x10   :  { %s22_s9 = sshll.u32 %s854_s8, 4  ;;  %s45_s11 = sshll.u32 %s855_s10, 4  ;;  %s23_s9 = int_to_ptr.vmem [resolvable:$true] %s22_s9  ;;  %s46_s11 = int_to_ptr.vmem [resolvable:$true] %s45_s11 }
  0x11   :  { %s771_s12 = scalar_lea.vmem %s23_s9, 128  ;;  %p776_p6 = scmp.lt.s32.totalorder %s23_s9, %s23_s9 }
  0x12   :  { %p772_p5 = scmp.ne.s32.totalorder %s23_s9, %s771_s12  ;;  %p777_p7 = scmp.lt.s32.totalorder %s771_s12, %s771_s12 }
  0x14   :  { %p778_p8 = por %p777_p7, %p776_p6 }
  0x16   :  { %p779_p9 = pnand %p778_p8, %p772_p5 }
  0x18   :  { %782 = shalt.err (!%p779_p9)
}
  0x19   :  { %25 = dma.hbm_to_vmem [thread:$0]  %s971_s0, 128, %s23_s9, [#allocation3]  }
  0x1a   :  { %s791_s15 = scalar_lea.vmem %s46_s11, 6144  ;;  %p796_p11 = scmp.lt.s32.totalorder %s46_s11, %s46_s11 }
  0x1b   :  { %p792_p10 = scmp.ne.s32.totalorder %s46_s11, %s791_s15  ;;  %p797_p12 = scmp.lt.s32.totalorder %s791_s15, %s791_s15 }
  0x1d   :  { %p798_p13 = por %p797_p12, %p796_p11 }
  0x1f   :  { %p799_p0 = pnand %p798_p13, %p792_p10 }
  0x21   :  { %802 = shalt.err (!%p799_p0)
}
  0x22   :  { %s856_s1 = smov 128   ;;  %s857_s16 = smov 8  }
  0x23   :  { %51 = dma.hbm_to_vmem [thread:$0]  %s974_s3, 6144, %s46_s11, [#allocation6], %s856_s1, %s856_s1, %s857_s16  }
  0x24   :  { %s858_s19 = smov [#allocation8]  }
  0x25   :  { %s59_s20 = sshll.u32 %s858_s19, 4  ;;  %s60_s20 = int_to_ptr.vmem [resolvable:$true] %s59_s20 }
  0x26   :  { %s811_s21 = scalar_lea.vmem %s60_s20, 2048  ;;  %p816_p2 = scmp.lt.s32.totalorder %s60_s20, %s60_s20 }
  0x27   :  { %p812_p1 = scmp.ne.s32.totalorder %s60_s20, %s811_s21  ;;  %p817_p3 = scmp.lt.s32.totalorder %s811_s21, %s811_s21 }
  0x29   :  { %p818_p4 = por %p817_p3, %p816_p2 }
  0x2b   :  { %p819_p5 = pnand %p818_p4, %p812_p1 }
  0x2d   :  { %822 = shalt.err (!%p819_p5)
}
  0x2e   :  { %65 = dma.hbm_to_vmem [thread:$0]  %s976_s5, 2048, %s60_s20, [#allocation9], %s856_s1, %s856_s1, %s857_s16  }
  0x2f   :  { %843 = dma.done.wait [#allocation3], 128  }
  0x30   :  { %844 = vsyncadd [#allocation3], 4294967168 }
  0x31   :  { %845 = dma.done.wait [#allocation6], 7680  }
  0x32   :  { %846 = vsyncadd [#allocation6], 4294959616 }
  0x33   :  { %847 = dma.done.wait [#allocation9], 2048  }
  0x34   :  { %848 = vsyncadd [#allocation9], 4294965248  ;;  %v859_v0 = vmov 0.0   ;;  %v91_v1 = vld [vmem:[#allocation5 + $0x50] sm:$0xff]  ;;  %v90_v2 = vld [vmem:[#allocation5 + $0x48] sm:$0xff]  ;;  %vm110_vm0 = vcmask 261120   ;;  %v95_v62 = vlaneseq }
  0x35   :  { %178 = vmatprep.mubr.f32.mxu1 %v859_v0  ;;  %v88_v3 = vld [vmem:[#allocation5 + $0x38] sm:$0xff]  ;;  %138 = vmatprep.subr.mxu1 %v91_v1  ;;  %v87_v4 = vld [vmem:[#allocation5 + $0x30] sm:$0xff]  ;;  %v85_v5 = vld [vmem:[#allocation5 + $0x20] sm:$0xff]  ;;  %vm860_vm1 = vmmov 0   ;;  %s861_s26 = smov [#allocation10]  }
  0x36   :  { %139 = vmatpush1.msra.mxu1 %v90_v2  ;;  %v84_v6 = vld [vmem:[#allocation5 + $0x18] sm:$0xff]  ;;  %v82_v7 = vld [vmem:[#allocation5 + $0x8] sm:$0xff]  ;;  %v81_v10 = vld [vmem:[#allocation5] sm:$0xff]  ;;  %v96_v63 = vshrl.u32 %v95_v62, 7  ;;  %s562_s27 = sshll.u32 %s861_s26, 4  ;;  %s563_s27 = int_to_ptr.vmem [resolvable:$true] %s562_s27 }
  0x37   :  { %140 = vmatprep.subr.mxu1 %v88_v3  ;;  %v295_v8 = vld [vmem:[#allocation7 + $0xf8] sm:$0xff]  ;;  %v294_v11 = vld [vmem:[#allocation7 + $0xf0] sm:$0xff]  ;;  %v293_v15 = vld [vmem:[#allocation7 + $0xe8] sm:$0xff]  ;;  %p828_p7 = scmp.lt.s32.totalorder %s563_s27, %s563_s27 }
  0x38   :  { %141 = vmatpush1.msra.mxu1 %v87_v4  ;;  %v279_v9 = vld [vmem:[#allocation7 + $0x78] sm:$0xff]  ;;  %582 = vmatprep.subr.mxu0 %v295_v8  ;;  %v278_v12 = vld [vmem:[#allocation7 + $0x70] sm:$0xff]  ;;  %v89_v16 = vld [vmem:[#allocation5 + $0x40] sm:$0xff]  ;;  %v97_v1 = vsub.s32 0, %v96_v63  ;;  %v101_v3 = vsub.s32 1, %v96_v63  ;;  %v105_v8 = vsub.s32 2, %v96_v63 }
  0x39   :  { %142 = vmatprep.subr.mxu1 %v85_v5  ;;  %v80_v13 = vld [vmem:[#allocation2] sm:$0xff]  ;;  %583 = vmatpush3.msra.mxu0 %v279_v9  ;;  %v277_v17 = vld [vmem:[#allocation7 + $0x68] sm:$0xff]  ;;  %v292_v18 = vld [vmem:[#allocation7 + $0xe0] sm:$0xff] }
  0x3a   :  { %143 = vmatpush1.msra.mxu1 %v84_v6  ;;  %v92_v14 = vld [vmem:[#allocation5 + $0x58] sm:$0xff]  ;;  %584 = vmatprep.subr.mxu0 %v294_v11  ;;  %v86_v19 = vld [vmem:[#allocation5 + $0x28] sm:$0xff]  ;;  %v276_v20 = vld [vmem:[#allocation7 + $0x60] sm:$0xff] }
  0x3b   :  { %144 = vmatprep.subr.mxu1 %v82_v7  ;;  %585 = vmatpush3.msra.mxu0 %v278_v12  ;;  %v291_v21 = vld [vmem:[#allocation7 + $0xd8] sm:$0xff]  ;;  %v83_v22 = vld [vmem:[#allocation5 + $0x10] sm:$0xff]  ;;  %v289_v28 = vld [vmem:[#allocation7 + $0xc8] sm:$0xff] }
  0x3c   :  { %145 = vmatpush1.msra.mxu1 %v81_v10  ;;  %586 = vmatprep.subr.mxu0 %v293_v15  ;;  %v275_v23 = vld [vmem:[#allocation7 + $0x58] sm:$0xff]  ;;  %v290_v25 = vld [vmem:[#allocation7 + $0xd0] sm:$0xff]  ;;  %v273_v29 = vld [vmem:[#allocation7 + $0x48] sm:$0xff] }
  0x3d   :  { %573 = vmatmul.mubr.msk.f32.vlgmr.msra.gmra.mxu1 %vm110_vm0, %v80_v13  ;;  %651 = vmatprep.subr.mxu1 %v859_v0  ;;  %v311_v24 = vld [vmem:[#allocation7 + $0x178] sm:$0xff]  ;;  %v274_v26 = vld [vmem:[#allocation7 + $0x50] sm:$0xff]  ;;  %v309_v30 = vld [vmem:[#allocation7 + $0x168] sm:$0xff] }
  0x3e   :  { %652 = vmatpush3.msra.mxu1 %v92_v14  ;;  %659 = vmatprep.mubr.msk.f32.mxu1 %vm860_vm1, %v859_v0  ;;  %v310_v27 = vld [vmem:[#allocation7 + $0x170] sm:$0xff]  ;;  %v288_v31 = vld [vmem:[#allocation7 + $0xc0] sm:$0xff]  ;;  %v287_v34 = vld [vmem:[#allocation7 + $0xb8] sm:$0xff] }
  0x3f   :  { %653 = vmatprep.subr.mxu1 %v859_v0  ;;  %587 = vmatpush3.msra.mxu0 %v277_v17  ;;  %v272_v32 = vld [vmem:[#allocation7 + $0x40] sm:$0xff]  ;;  %v271_v35 = vld [vmem:[#allocation7 + $0x38] sm:$0xff]  ;;  %v286_v37 = vld [vmem:[#allocation7 + $0xb0] sm:$0xff] }
  0x40   :  { %654 = vmatpush3.msra.mxu1 %v89_v16  ;;  %588 = vmatprep.subr.mxu0 %v292_v18  ;;  %v308_v33 = vld [vmem:[#allocation7 + $0x160] sm:$0xff]  ;;  %v307_v36 = vld [vmem:[#allocation7 + $0x158] sm:$0xff]  ;;  %v270_v38 = vld [vmem:[#allocation7 + $0x30] sm:$0xff] }
  0x41   :  { %655 = vmatprep.subr.mxu1 %v859_v0  ;;  %589 = vmatpush3.msra.mxu0 %v276_v20  ;;  %v306_v39 = vld [vmem:[#allocation7 + $0x150] sm:$0xff]  ;;  %v285_v40 = vld [vmem:[#allocation7 + $0xa8] sm:$0xff]  ;;  %v284_v43 = vld [vmem:[#allocation7 + $0xa0] sm:$0xff] }
  0x42   :  { %656 = vmatpush3.msra.mxu1 %v86_v19  ;;  %590 = vmatprep.subr.mxu0 %v291_v21  ;;  %v269_v41 = vld [vmem:[#allocation7 + $0x28] sm:$0xff]  ;;  %v304_v44 = vld [vmem:[#allocation7 + $0x140] sm:$0xff]  ;;  %v303_v45 = vld [vmem:[#allocation7 + $0x138] sm:$0xff] }
  0x43   :  { %657 = vmatprep.subr.mxu1 %v859_v0  ;;  %591 = vmatpush3.msra.mxu0 %v275_v23  ;;  %v305_v42 = vld [vmem:[#allocation7 + $0x148] sm:$0xff]  ;;  %v268_v46 = vld [vmem:[#allocation7 + $0x20] sm:$0xff]  ;;  %v283_v47 = vld [vmem:[#allocation7 + $0x98] sm:$0xff] }
  0x44   :  { %658 = vmatpush3.msra.mxu1 %v83_v22  ;;  %592 = vmatprep.subr.mxu0 %v290_v25  ;;  %v302_v48 = vld [vmem:[#allocation7 + $0x130] sm:$0xff]  ;;  %v267_v49 = vld [vmem:[#allocation7 + $0x18] sm:$0xff]  ;;  %v301_v51 = vld [vmem:[#allocation7 + $0x128] sm:$0xff] }
  0x45   :  { %660 = vmatmul.mubr.msk.f32.vlgmr.msra.gmra.mxu1 %vm110_vm0, %v80_v13  ;;  %662 = vmatprep.subr.mxu1 %v859_v0  ;;  %v282_v50 = vld [vmem:[#allocation7 + $0x90] sm:$0xff]  ;;  %v281_v53 = vld [vmem:[#allocation7 + $0x88] sm:$0xff]  ;;  %v300_v54 = vld [vmem:[#allocation7 + $0x120] sm:$0xff] }
  0x46   :  { %663 = vmatpush3.msra.mxu1 %v311_v24  ;;  %593 = vmatpush3.msra.mxu0 %v274_v26  ;;  %v266_v52 = vld [vmem:[#allocation7 + $0x10] sm:$0xff]  ;;  %v265_v55 = vld [vmem:[#allocation7 + $0x8] sm:$0xff]  ;;  %v280_v56 = vld [vmem:[#allocation7 + $0x80] sm:$0xff] }
  0x47   :  { %664 = vmatprep.subr.mxu1 %v859_v0  ;;  %594 = vmatprep.subr.mxu0 %v289_v28  ;;  %v299_v57 = vld [vmem:[#allocation7 + $0x118] sm:$0xff]  ;;  %v264_v58 = vld [vmem:[#allocation7] sm:$0xff]  ;;  %v298_v59 = vld [vmem:[#allocation7 + $0x110] sm:$0xff] }
  0x48   :  { %665 = vmatpush3.msra.mxu1 %v310_v27  ;;  %595 = vmatpush3.msra.mxu0 %v273_v29  ;;  %v297_v60 = vld [vmem:[#allocation7 + $0x108] sm:$0xff]  ;;  %v296_v61 = vld [vmem:[#allocation7 + $0x100] sm:$0xff]  ;;  %v93_v2 = vld [vmem:[%s973_s2] sm:$0x7] }
  0x49   :  { %666 = vmatprep.subr.mxu1 %v859_v0  ;;  %596 = vmatprep.subr.mxu0 %v288_v31  ;;  %v98_v4 = vrot.slane %v93_v2, %v97_v1  ;;  %v102_v5 = vrot.slane %v93_v2, %v101_v3  ;;  %v106_v12 = vrot.slane %v93_v2, %v105_v8  ;;  %v477_v15 = vld [vmem:[#allocation8 + $0x78] sm:$0xff]  ;;  %v476_v19 = vld [vmem:[#allocation8 + $0x70] sm:$0xff]  ;;  %v475_v22 = vld [vmem:[#allocation8 + $0x68] sm:$0xff] }
  0x4a   :  { %667 = vmatpush3.msra.mxu1 %v309_v30  ;;  %597 = vmatpush3.msra.mxu0 %v272_v32  ;;  %v474_v24 = vld [vmem:[#allocation8 + $0x60] sm:$0xff]  ;;  %v473_v25 = vld [vmem:[#allocation8 + $0x58] sm:$0xff]  ;;  %v472_v26 = vld [vmem:[#allocation8 + $0x50] sm:$0xff] }
  0x4b   :  { %668 = vmatprep.subr.mxu1 %v859_v0  ;;  %598 = vmatprep.subr.mxu0 %v287_v34  ;;  %v471_v27 = vld [vmem:[#allocation8 + $0x48] sm:$0xff]  ;;  %v470_v28 = vld [vmem:[#allocation8 + $0x40] sm:$0xff]  ;;  %v469_v29 = vld [vmem:[#allocation8 + $0x38] sm:$0xff] }
  0x4c   :  { %669 = vmatpush3.msra.mxu1 %v308_v33  ;;  %599 = vmatpush3.msra.mxu0 %v271_v35  ;;  %v468_v30 = vld [vmem:[#allocation8 + $0x30] sm:$0xff]  ;;  %v467_v31 = vld [vmem:[#allocation8 + $0x28] sm:$0xff]  ;;  %v466_v32 = vld [vmem:[#allocation8 + $0x20] sm:$0xff] }
  0x4d   :  { %670 = vmatprep.subr.mxu1 %v859_v0  ;;  %600 = vmatprep.subr.mxu0 %v286_v37  ;;  %v465_v33 = vld [vmem:[#allocation8 + $0x18] sm:$0xff]  ;;  %v464_v34 = vld [vmem:[#allocation8 + $0x10] sm:$0xff]  ;;  %v463_v35 = vld [vmem:[#allocation8 + $0x8] sm:$0xff] }
  0x4e   :  { %671 = vmatpush3.msra.mxu1 %v307_v36  ;;  %601 = vmatpush3.msra.mxu0 %v270_v38  ;;  %v462_v36 = vld [vmem:[#allocation8] sm:$0xff] }
  0x4f   :  { %672 = vmatprep.subr.mxu1 %v859_v0  ;;  %602 = vmatprep.subr.mxu0 %v285_v40 }
  0x50   :  { %673 = vmatpush3.msra.mxu1 %v306_v39  ;;  %603 = vmatpush3.msra.mxu0 %v269_v41  ;;  %v575_v39 = vld [vmem:[%s975_s4] ss:$0 sm:$0xff]  ;;  %s823_s4 = scalar_lea.vmem %s563_s27, 128 }
  0x51   :  { %674 = vmatprep.subr.mxu1 %v859_v0  ;;  %604 = vmatprep.subr.mxu0 %v284_v43  ;;  %p824_p6 = scmp.ne.s32.totalorder %s563_s27, %s823_s4  ;;  %p829_p8 = scmp.lt.s32.totalorder %s823_s4, %s823_s4 }
  0x52   :  { %675 = vmatpush3.msra.mxu1 %v305_v42  ;;  %694 = vmatprep.mubr.msk.f32.mxu1 %vm860_vm1, %v859_v0 }
  0x53   :  { %676 = vmatprep.subr.mxu1 %v859_v0  ;;  %605 = vmatpush3.msra.mxu0 %v268_v46  ;;  %p830_p9 = por %p829_p8, %p828_p7 }
  0x54   :  { %677 = vmatpush3.msra.mxu1 %v304_v44  ;;  %606 = vmatprep.subr.mxu0 %v283_v47 }
  0x55   :  { %678 = vmatprep.subr.mxu1 %v859_v0  ;;  %607 = vmatpush3.msra.mxu0 %v267_v49  ;;  %p831_p10 = pnand %p830_p9, %p824_p6 }
  0x56   :  { %679 = vmatpush3.msra.mxu1 %v303_v45  ;;  %608 = vmatprep.subr.mxu0 %v282_v50 }
  0x57   :  { %680 = vmatprep.subr.mxu1 %v859_v0  ;;  %609 = vmatpush3.msra.mxu0 %v266_v52 }
  0x58   :  { %681 = vmatpush3.msra.mxu1 %v302_v48  ;;  %610 = vmatprep.subr.mxu0 %v281_v53 }
  0x59   :  { %682 = vmatprep.subr.mxu1 %v859_v0  ;;  %611 = vmatpush3.msra.mxu0 %v265_v55 }
  0x5a   :  { %683 = vmatpush3.msra.mxu1 %v301_v51  ;;  %612 = vmatprep.subr.mxu0 %v280_v56 }
  0x5b   :  { %684 = vmatprep.subr.mxu1 %v859_v0  ;;  %613 = vmatpush3.msra.mxu0 %v264_v58 }
  0x5c   :  { %685 = vmatpush3.msra.mxu1 %v300_v54  ;;  %697 = vmatprep.subr.mxu0 %v859_v0 }
  0x5d   :  { %686 = vmatprep.subr.mxu1 %v859_v0 }
  0x5e   :  { %687 = vmatpush3.msra.mxu1 %v299_v57 }
  0x5f   :  { %688 = vmatprep.subr.mxu1 %v859_v0 }
  0x60   :  { %689 = vmatpush3.msra.mxu1 %v298_v59 }
  0x61   :  { %690 = vmatprep.subr.mxu1 %v859_v0 }
  0x62   :  { %691 = vmatpush3.msra.mxu1 %v297_v60 }
  0x63   :  { %692 = vmatprep.subr.mxu1 %v859_v0 }
  0x64   :  { %693 = vmatpush3.msra.mxu1 %v296_v61 }
  0xfd   :  { %v180_v6 = vpop.f32.mrf.mxu1 }
  0xfe   :  { %v181_v7 = vadd.f32 %v180_v6, %v98_v4 }
  0xff   :  { %v182_v9 = vpop.f32.mrf.mxu1 }
 0x100   :  { %v183_v10 = vadd.f32 %v182_v9, %v102_v5  ;;  %v258_v11 = vmul.f32 0.01, %v181_v7  ;;  %vm255_vm3 = vcmp.gt.f32.partialorder %v181_v7, 0.0 }
 0x102   :  { %vm256_vm2 = vcmp.gt.f32.partialorder %v183_v10, 0.0  ;;  %v259_v13 = vmul.f32 0.01, %v183_v10  ;;  %v261_v17 = vsel %vm255_vm3, %v181_v7, %v258_v11 }
 0x104   :  { %v262_v14 = vsel %vm256_vm2, %v183_v10, %v259_v13 }
 0x105   :  { %v251_v16 = vpop.f32.mrf.mxu1  ;;  %383 = vmatprep.mubr.f32.mxu0 %v262_v14 }
 0x106   :  { %v252_v18 = vadd.f32 %v251_v16, %v106_v12  ;;  %384 = vmatmul.mubr.f32.vlgmr.msra.gmra.mxu0 %v261_v17 }
 0x107   :  { %v661_v20 = vpop.f32.mrf.mxu1  ;;  %698 = vmatpush3.msra.mxu0 %v477_v15  ;;  %729 = vmatprep.mubr.msk.f32.mxu0 %vm860_vm1, %v859_v0 }
 0x108   :  { %vm257_vm4 = vcmp.gt.f32.partialorder %v252_v18, 0.0  ;;  %v260_v21 = vmul.f32 0.01, %v252_v18  ;;  %699 = vmatprep.subr.mxu0 %v859_v0 }
 0x109   :  { %700 = vmatpush3.msra.mxu0 %v476_v19 }
 0x10a   :  { %v263_v23 = vsel %vm257_vm4, %v252_v18, %v260_v21  ;;  %701 = vmatprep.subr.mxu0 %v859_v0 }
 0x10b   :  { %695 = vmatmul.mubr.f32.vlgmr.msra.gmra.mxu1 %v263_v23  ;;  %702 = vmatpush3.msra.mxu0 %v475_v22 }
 0x10c   :  { %703 = vmatprep.subr.mxu0 %v859_v0 }
 0x10d   :  { %704 = vmatpush3.msra.mxu0 %v474_v24 }
 0x10e   :  { %705 = vmatprep.subr.mxu0 %v859_v0 }
 0x10f   :  { %706 = vmatpush3.msra.mxu0 %v473_v25 }
 0x110   :  { %707 = vmatprep.subr.mxu0 %v859_v0 }
 0x111   :  { %708 = vmatpush3.msra.mxu0 %v472_v26 }
 0x112   :  { %709 = vmatprep.subr.mxu0 %v859_v0 }
 0x113   :  { %710 = vmatpush3.msra.mxu0 %v471_v27 }
 0x114   :  { %711 = vmatprep.subr.mxu0 %v859_v0 }
 0x115   :  { %712 = vmatpush3.msra.mxu0 %v470_v28 }
 0x116   :  { %713 = vmatprep.subr.mxu0 %v859_v0 }
 0x117   :  { %714 = vmatpush3.msra.mxu0 %v469_v29 }
 0x118   :  { %715 = vmatprep.subr.mxu0 %v859_v0 }
 0x119   :  { %716 = vmatpush3.msra.mxu0 %v468_v30 }
 0x11a   :  { %717 = vmatprep.subr.mxu0 %v859_v0 }
 0x11b   :  { %718 = vmatpush3.msra.mxu0 %v467_v31 }
 0x11c   :  { %719 = vmatprep.subr.mxu0 %v859_v0 }
 0x11d   :  { %720 = vmatpush3.msra.mxu0 %v466_v32 }
 0x11e   :  { %721 = vmatprep.subr.mxu0 %v859_v0 }
 0x11f   :  { %722 = vmatpush3.msra.mxu0 %v465_v33 }
 0x120   :  { %723 = vmatprep.subr.mxu0 %v859_v0 }
 0x121   :  { %724 = vmatpush3.msra.mxu0 %v464_v34 }
 0x122   :  { %725 = vmatprep.subr.mxu0 %v859_v0 }
 0x123   :  { %726 = vmatpush3.msra.mxu0 %v463_v35 }
 0x124   :  { %727 = vmatprep.subr.mxu0 %v859_v0  ;;  %v576_v0 = vld [vmem:[%s977_s6] ss:$0 sm:$0xff] }
 0x125   :  { %728 = vmatpush3.msra.mxu0 %v462_v36 }
 0x1c6   :  { %v614_v37 = vpop.f32.mrf.mxu0 }
 0x1c8   :  { %v615_v38 = vpop.f32.mrf.mxu0 }
 0x1c9   :  { %v616_v40 = vadd.f32 %v615_v38, %v614_v37 }
 0x1cb   :  { %v386_v41 = vadd.f32 %v616_v40, %v575_v39  ;;  %v455_v42 = vpop.f32.mrf.mxu1 }
 0x1cd   :  { %v456_v43 = vadd.f32 %v455_v42, %v386_v41  ;;  %v696_v44 = vpop.f32.mrf.mxu1 }
 0x1cf   :  { %vm459_vm5 = vcmp.gt.f32.partialorder %v456_v43, 0.0  ;;  %v460_v45 = vmul.f32 0.01, %v456_v43 }
 0x1d1   :  { %v461_v46 = vsel %vm459_vm5, %v456_v43, %v460_v45 }
 0x1d2   :  { %730 = vmatmul.mubr.f32.vlgmr.msra.gmra.mxu0 %v461_v46 }
 0x292   :  { %v551_v47 = vpop.f32.mrf.mxu0 }
 0x293   :  { %v552_v48 = vadd.f32 %v576_v0, %v551_v47 }
 0x294   :  { %v731_v49 = vpop.f32.mrf.mxu0 }
 0x295   :  { %555 = vst [vmem:[#allocation10] sm:$0xff] %v552_v48 }
 0x296   :  { %834 = shalt.err (!%p831_p10)
}
 0x297   :  { %565 = dma.vmem_to_hbm [thread:$0]  %s563_s27, 128, %s978_s7, [#allocation4]  }
 0x298   :  { %849 = dma.done.wait [#allocation4], 128  }
 0x299   :  { %850 = vsyncadd [#allocation4], 4294967168 }
 0x29a   :  { %569 = vsyncpa [#allocation3], 1 }
 0x29b   :  { %570 = vsyncpa [#allocation6], 1 }
 0x29c   :  { %571 = vsyncpa [#allocation9], 1 }
 0x29d   :  { %572 = vsyncpa [#allocation4], 1 }

</bundles_post_ra>
